<compile_context>
chip_gen: v7x
topology: tpu7x:2x2x1
jax: 0.10.0
libtpu: 0.0.40
codegen_flags: <defaults>
</compile_context>

<pallas_src>
import jax
import jax.numpy as jnp
from jax.experimental import pallas as pl
from jax.experimental.pallas import tpu as pltpu

# ---- module hyper-parameters (consistent with __init__: zDim, yDim, n_seq, n_vol) ----
Z_DIM = 16
Y_DIM = 16
N_SEQ = 8
N_VOL = 16
N_CLASS = 4

D_ONEHOT = N_SEQ * N_VOL                 # 128
D_TOTAL = Z_DIM + Y_DIM + D_ONEHOT       # 160

BATCH = 16
MAX_TILE_B = 512                         # single grid step up to this batch; tile beyond

LANES = 128                              # packed-parameter lane width (full vreg lane dim)

# ---- packed parameter layout: one (PARAM_ROWS, 128) f32 slab, all row offsets %8 == 0 ----
ROW_WBIG = 0                             # rows [0, 160)   : fused condition weight (D_TOTAL, 64) in cols 0:64
ROW_WC = D_TOTAL                         # rows [160, 176) : classifier weight (Z_DIM, N_CLASS) zero-padded to 128 cols
ROW_BBIG = ROW_WC + Z_DIM                # row 176         : fused bias [b_s | b_t | b_s' | b_t'] in cols 0:64
ROW_BC = ROW_BBIG + 1                    # row 177         : classifier bias (N_CLASS valid lanes)
PARAM_ROWS = ((ROW_BC + 1 + 7) // 8) * 8  # pad sublanes -> 184


def _flow_resize_kernel(x_ref, p_ref, out_ref):
    x = x_ref[...]                                            # (TB, D_TOTAL)
    latent = x[:, :Z_DIM]                                     # lanes 0:16 (inside lane-tile 0)

    # unpack parameters (static, sublane-tile-aligned slices of the packed slab)
    w_big = p_ref[ROW_WBIG:ROW_WBIG + D_TOTAL, :]             # (D_TOTAL, 128); cols 64:128 are zero
    w_c = p_ref[ROW_WC:ROW_WC + Z_DIM, :]                     # (Z_DIM, 128);  cols N_CLASS: are zero
    b_big = p_ref[ROW_BBIG:ROW_BBIG + 1, :]                   # (1, 128)
    b_c = p_ref[ROW_BC:ROW_BC + 1, :]                         # (1, 128)

    # One fused MXU matmul produces every condition projection for both flow passes:
    #   cols  0:16  -> s1_pre = cond     @ W_s + b_s
    #   cols 16:32  -> t1     = cond     @ W_t + b_t
    #   cols 32:48  -> s2_pre = cond_new @ W_s + b_s   (model_g + standardization pre-folded)
    #   cols 48:64  -> t2     = cond_new @ W_t + b_t
    st = jnp.dot(x, w_big, preferred_element_type=jnp.float32) + b_big   # (TB, 128)

    s1 = jnp.exp(jnp.tanh(st[:, 0:Z_DIM]))                    # flow forward scale (orig condition)
    t1 = st[:, Z_DIM:2 * Z_DIM]                               # flow forward shift
    s2_inv = jnp.exp(-jnp.tanh(st[:, 2 * Z_DIM:3 * Z_DIM]))   # flow.reverse inverse scale (new cond)
    t2 = st[:, 3 * Z_DIM:4 * Z_DIM]                           # flow.reverse shift

    zz = latent * s1 + t1                                     # model.flow(x, c)
    trans_z = (zz - t2) * s2_inv                              # model.flow.reverse(zz, c')

    # model_class: lane-dense (128-wide, zero-padded) classifier logits -> unmasked stores
    out_ref[...] = jnp.dot(trans_z, w_c, preferred_element_type=jnp.float32) + b_c


def prepare_params(wg, bg, mu, sigma, ws, bs, wt, bt, wc, bc):
    """One-time parameter folding/packing (done outside the kernel)."""
    hi = jax.lax.Precision.HIGHEST
    inv_sigma = 1.0 / sigma                                   # (1, Y_DIM)
    wg_f = wg * inv_sigma                                     # fold standardization: column scale
    bg_f = (bg - mu) * inv_sigma                              # fold standardization: bias

    # fold model_g (+std) through the flow s/t projections
    wgs = jnp.dot(wg_f, ws, precision=hi)                     # (D_ONEHOT, Z_DIM)
    wgt = jnp.dot(wg_f, wt, precision=hi)                     # (D_ONEHOT, Z_DIM)
    bgs = jnp.dot(bg_f, ws, precision=hi) + bs                # (1, Z_DIM)
    bgt = jnp.dot(bg_f, wt, precision=hi) + bt                # (1, Z_DIM)

    w_big = jnp.zeros((D_TOTAL, LANES), jnp.float32)
    w_big = w_big.at[Z_DIM:Z_DIM + Y_DIM, 0:Z_DIM].set(ws)                     # cond -> s1
    w_big = w_big.at[Z_DIM:Z_DIM + Y_DIM, Z_DIM:2 * Z_DIM].set(wt)             # cond -> t1
    w_big = w_big.at[Z_DIM + Y_DIM:, 2 * Z_DIM:3 * Z_DIM].set(wgs)             # onehot -> s2
    w_big = w_big.at[Z_DIM + Y_DIM:, 3 * Z_DIM:4 * Z_DIM].set(wgt)             # onehot -> t2

    b_big = jnp.zeros((LANES,), jnp.float32)
    b_big = b_big.at[0:Z_DIM].set(bs[0])
    b_big = b_big.at[Z_DIM:2 * Z_DIM].set(bt[0])
    b_big = b_big.at[2 * Z_DIM:3 * Z_DIM].set(bgs[0])
    b_big = b_big.at[3 * Z_DIM:4 * Z_DIM].set(bgt[0])

    params = jnp.zeros((PARAM_ROWS, LANES), jnp.float32)
    params = params.at[ROW_WBIG:ROW_WBIG + D_TOTAL, :].set(w_big)
    params = params.at[ROW_WC:ROW_WC + Z_DIM, 0:N_CLASS].set(wc)
    params = params.at[ROW_BBIG, :].set(b_big)
    params = params.at[ROW_BC, 0:N_CLASS].set(bc[0])
    return params


def flow_resize_label_class(input_data, params):
    """input_data: (B, zDim + yDim + n_seq*n_vol) f32 -> (B, N_CLASS) f32 logits."""
    B, D = input_data.shape
    assert D == D_TOTAL

    # whole batch in one grid step when small; large batch tiles (256 rows) otherwise
    tile_b = B if B <= MAX_TILE_B else 256
    assert B % tile_b == 0
    grid = (B // tile_b,)

    in_specs = [
        pl.BlockSpec((tile_b, D_TOTAL), lambda i: (i, 0)),       # input rows (full feature width)
        pl.BlockSpec((PARAM_ROWS, LANES), lambda i: (0, 0)),     # packed parameter slab
    ]
    out_specs = pl.BlockSpec((tile_b, LANES), lambda i: (i, 0))  # lane-dense padded logits

    out_padded = pl.pallas_call(
        _flow_resize_kernel,
        out_shape=jax.ShapeDtypeStruct((B, LANES), jnp.float32),
        grid_spec=pltpu.PrefetchScalarGridSpec(
            num_scalar_prefetch=0, grid=grid,
            in_specs=in_specs, out_specs=out_specs),
        compiler_params=pltpu.CompilerParams(
            dimension_semantics=("parallel",)),
    )(input_data, params)

    return out_padded[:, :N_CLASS]


def _reference(input_data, raw_params):
    """Unfused pure-JAX reference matching the PyTorch forward semantics."""
    wg, bg, mu, sigma, ws, bs, wt, bt, wc, bc = raw_params
    latent = input_data[:, :Z_DIM]
    cond = input_data[:, Z_DIM:Z_DIM + Y_DIM]
    onehot = input_data[:, Z_DIM + Y_DIM:]
    emb = onehot @ wg + bg
    cond_new = (emb - mu) / sigma
    s1 = jnp.exp(jnp.tanh(cond @ ws + bs)); t1 = cond @ wt + bt
    zz = latent * s1 + t1
    s2 = jnp.exp(jnp.tanh(cond_new @ ws + bs)); t2 = cond_new @ wt + bt
    trans_z = (zz - t2) / s2
    return trans_z @ wc + bc


if __name__ == "__main__":
    key = jax.random.PRNGKey(0)
    keys = jax.random.split(key, 12)

    # deterministic synthetic parameters
    wg = jax.random.normal(keys[0], (D_ONEHOT, Y_DIM), jnp.float32) * 0.1
    bg = jax.random.normal(keys[1], (1, Y_DIM), jnp.float32) * 0.1
    mu = jax.random.normal(keys[2], (1, Y_DIM), jnp.float32) * 0.1
    sigma = 0.5 + jax.nn.softplus(jax.random.normal(keys[3], (1, Y_DIM), jnp.float32))  # > 0
    ws = jax.random.normal(keys[4], (Y_DIM, Z_DIM), jnp.float32) * 0.1
    bs = jax.random.normal(keys[5], (1, Z_DIM), jnp.float32) * 0.1
    wt = jax.random.normal(keys[6], (Y_DIM, Z_DIM), jnp.float32) * 0.1
    bt = jax.random.normal(keys[7], (1, Z_DIM), jnp.float32) * 0.1
    wc = jax.random.normal(keys[8], (Z_DIM, N_CLASS), jnp.float32) * 0.1
    bc = jax.random.normal(keys[9], (1, N_CLASS), jnp.float32) * 0.1
    raw_params = (wg, bg, mu, sigma, ws, bs, wt, bt, wc, bc)
    kernel_params = prepare_params(*raw_params)   # one-time fold/pack

    # input_data = [latent | condition | flattened one-hot perturbation]
    latent = jax.random.normal(keys[10], (BATCH, Z_DIM), jnp.float32)
    condition = jax.random.normal(keys[11], (BATCH, Y_DIM), jnp.float32)
    vol_idx = jax.random.randint(jax.random.PRNGKey(123), (BATCH, N_SEQ), 0, N_VOL)
    onehot = jax.nn.one_hot(vol_idx, N_VOL, dtype=jnp.float32).reshape(BATCH, D_ONEHOT)
    input_data = jnp.concatenate([latent, condition, onehot], axis=1)

    out = flow_resize_label_class(input_data, kernel_params)
    out = jax.block_until_ready(out)

    ref = _reference(input_data, raw_params)
    assert out.shape == (BATCH, N_CLASS)
    assert jnp.allclose(out, ref, rtol=1e-5, atol=1e-5), "mismatch vs pure-JAX reference"

    print("KERNEL_OK")
</pallas_src>

<mosaic_0001>
module attributes {stable_mosaic.version = 11 : i64} {
  func.func @_flow_resize_kernel(%arg0: i32, %arg1: memref<16x160xf32, #tpu.memory_space<vmem>>, %arg2: memref<184x128xf32, #tpu.memory_space<vmem>>, %arg3: memref<16x128xf32, #tpu.memory_space<vmem>>) attributes {dimension_semantics = [#tpu.dimension_semantics<parallel>], iteration_bounds = array<i64: 1>, scalar_prefetch = 0 : i64, scratch_operands = 0 : i64, tpu.core_type = #tpu.core_type<tc>, window_params = [{transform_indices = @transform_0, window_bounds = array<i64: 16, 160>}, {pipeline_mode = #tpu.pipeline_mode<synchronous>, transform_indices = @transform_1, window_bounds = array<i64: 184, 128>}, {transform_indices = @transform_2, window_bounds = array<i64: 16, 128>}]} {
    %c0 = arith.constant 0 : index
    %c0_0 = arith.constant 0 : index
    %0 = vector.load %arg1[%c0, %c0_0] : memref<16x160xf32, #tpu.memory_space<vmem>>, vector<16x160xf32>
    %1 = vector.extract_strided_slice %0 {offsets = [0, 0], sizes = [16, 16], strides = [1, 1]} : vector<16x160xf32> to vector<16x16xf32>
    %c0_1 = arith.constant 0 : index
    %c0_2 = arith.constant 0 : index
    %2 = vector.load %arg2[%c0_1, %c0_2] : memref<184x128xf32, #tpu.memory_space<vmem>>, vector<160x128xf32>
    %c160 = arith.constant 160 : index
    %c0_3 = arith.constant 0 : index
    %3 = vector.load %arg2[%c160, %c0_3] : memref<184x128xf32, #tpu.memory_space<vmem>>, vector<16x128xf32>
    %c176 = arith.constant 176 : index
    %c0_4 = arith.constant 0 : index
    %4 = vector.load %arg2[%c176, %c0_4] : memref<184x128xf32, #tpu.memory_space<vmem>>, vector<1x128xf32>
    %c177 = arith.constant 177 : index
    %c0_5 = arith.constant 0 : index
    %5 = vector.load %arg2[%c177, %c0_5] : memref<184x128xf32, #tpu.memory_space<vmem>>, vector<1x128xf32>
    %cst = arith.constant dense<0.000000e+00> : vector<16x128xf32>
    %6 = tpu.matmul %0, %2, %cst {dimension_numbers = #tpu.dot_dimension_numbers<[1], [0], [0], [1], [0, 0, 1, 1], [], []>} : vector<16x160xf32>, vector<160x128xf32>, vector<16x128xf32> -> vector<16x128xf32>
    %7 = vector.broadcast %4 : vector<1x128xf32> to vector<16x128xf32>
    %8 = arith.addf %6, %7 : vector<16x128xf32>
    %9 = vector.extract_strided_slice %8 {offsets = [0, 0], sizes = [16, 16], strides = [1, 1]} : vector<16x128xf32> to vector<16x16xf32>
    %10 = math.tanh %9 : vector<16x16xf32>
    %11 = math.exp %10 : vector<16x16xf32>
    %12 = vector.extract_strided_slice %8 {offsets = [0, 16], sizes = [16, 16], strides = [1, 1]} : vector<16x128xf32> to vector<16x16xf32>
    %13 = vector.extract_strided_slice %8 {offsets = [0, 32], sizes = [16, 16], strides = [1, 1]} : vector<16x128xf32> to vector<16x16xf32>
    %14 = math.tanh %13 : vector<16x16xf32>
    %cst_6 = arith.constant 0.000000e+00 : f32
    %15 = vector.broadcast %cst_6 : f32 to vector<16x16xf32>
    %16 = arith.subf %15, %14 : vector<16x16xf32>
    %17 = math.exp %16 : vector<16x16xf32>
    %18 = vector.extract_strided_slice %8 {offsets = [0, 48], sizes = [16, 16], strides = [1, 1]} : vector<16x128xf32> to vector<16x16xf32>
    %19 = arith.mulf %1, %11 : vector<16x16xf32>
    %20 = arith.addf %19, %12 : vector<16x16xf32>
    %21 = arith.subf %20, %18 : vector<16x16xf32>
    %22 = arith.mulf %21, %17 : vector<16x16xf32>
    %cst_7 = arith.constant dense<0.000000e+00> : vector<16x128xf32>
    %23 = tpu.matmul %22, %3, %cst_7 {dimension_numbers = #tpu.dot_dimension_numbers<[1], [0], [0], [1], [0, 0, 1, 1], [], []>} : vector<16x16xf32>, vector<16x128xf32>, vector<16x128xf32> -> vector<16x128xf32>
    %24 = vector.broadcast %5 : vector<1x128xf32> to vector<16x128xf32>
    %25 = arith.addf %23, %24 : vector<16x128xf32>
    %c0_8 = arith.constant 0 : index
    %c0_9 = arith.constant 0 : index
    %26 = vector.load %arg3[%c0_8, %c0_9] : memref<16x128xf32, #tpu.memory_space<vmem>>, vector<16x128xf32>
    tpu.vector_store %arg3[%c0_8, %c0_9], %25 {strides = array<i32>} : memref<16x128xf32, #tpu.memory_space<vmem>>, vector<16x128xf32>,
    return
  }
  func.func @transform_0(%arg0: i32) -> (i32, i32) {
    %c0_i32 = arith.constant 0 : i32
    %c0_i32_0 = arith.constant 0 : i32
    return %arg0, %c0_i32 : i32, i32
  }
  func.func @transform_1(%arg0: i32) -> (i32, i32) {
    %c0_i32 = arith.constant 0 : i32
    %c0_i32_0 = arith.constant 0 : i32
    %c0_i32_1 = arith.constant 0 : i32
    return %c0_i32, %c0_i32_0 : i32, i32
  }
  func.func @transform_2(%arg0: i32) -> (i32, i32) {
    %c0_i32 = arith.constant 0 : i32
    %c0_i32_0 = arith.constant 0 : i32
    return %arg0, %c0_i32 : i32, i32
  }
}

</mosaic_0001>

<bundles_post_ra>
// kernel: tpu_custom_call.1
= control target key start
LH: loop header
LB: loop body
LE: loop exit
PB: predicated region body
PF: predicated region fallthrough
CT: control target
= control target key end

     0   :  { %7 = vsyncpa [#allocation3], 0  ;;  %s518_s0 = inlined_call_operand.hbm [shape: f32[16,160], index: 0, kind: input, shape index: {}]   ;;  %s519_s1 = inlined_call_operand.hbm [shape: f32[184,128], index: 1, kind: input, shape index: {}]   ;;  %s520_s2 = inlined_call_operand.hbm [shape: f32[16,128], index: 2, kind: output, shape index: {}]  }
   0x1   :  { %8 = vsyncpa [#allocation6], 0 }
   0x2   :  { %9 = vsyncpa [#allocation4], 0  ;;  %s448_s9 = smov [#allocation2]   ;;  %s376_s13 = scalar_lea.hbm %s518_s0, 512 }
   0x3   :  { %s15_s10 = sshll.u32 %s448_s9, 4  ;;  %p377_p0 = scmp.ne.s32.totalorder %s518_s0, %s376_s13  ;;  %s16_s10 = int_to_ptr.vmem [resolvable:$true] %s15_s10 }
   0x4   :  { %p380_p1 = scmp.lt.u32.totalorder %s376_s13, %s518_s0 }
   0x6   :  { %p382_p2 = pnand %p380_p1, %p377_p0 }
   0x8   :  { %385 = shalt.err (!%p382_p2)
}
   0x9   :  { %s386_s18 = scalar_lea.vmem %s16_s10, 512  ;;  %p391_p4 = scmp.lt.s32.totalorder %s16_s10, %s16_s10 }
   0xa   :  { %p387_p3 = scmp.ne.s32.totalorder %s16_s10, %s386_s18  ;;  %p392_p5 = scmp.lt.s32.totalorder %s386_s18, %s386_s18 }
   0xc   :  { %p393_p6 = por %p392_p5, %p391_p4 }
   0xe   :  { %p394_p7 = pnand %p393_p6, %p387_p3 }
  0x10   :  { %397 = shalt.err (!%p394_p7)
}
  0x11   :  { %s449_s19 = smov 256   ;;  %s450_s20 = smov 16  }
  0x12   :  { %21 = dma.hbm_to_vmem [thread:$0]  %s518_s0, 512, %s16_s10, [#allocation3], %s449_s19, %s449_s19, %s450_s20  }
  0x13   :  { %s451_s23 = smov [#allocation5]   ;;  %s398_s27 = scalar_lea.hbm %s519_s1, 2944 }
  0x14   :  { %s27_s24 = sshll.u32 %s451_s23, 4  ;;  %p399_p8 = scmp.ne.s32.totalorder %s519_s1, %s398_s27  ;;  %s28_s24 = int_to_ptr.vmem [resolvable:$true] %s27_s24 }
  0x15   :  { %p402_p9 = scmp.lt.u32.totalorder %s398_s27, %s519_s1 }
  0x17   :  { %p404_p10 = pnand %p402_p9, %p399_p8 }
  0x19   :  { %407 = shalt.err (!%p404_p10)
}
  0x1a   :  { %s408_s4 = scalar_lea.vmem %s28_s24, 2944  ;;  %p413_p12 = scmp.lt.s32.totalorder %s28_s24, %s28_s24 }
  0x1b   :  { %p409_p11 = scmp.ne.s32.totalorder %s28_s24, %s408_s4  ;;  %p414_p13 = scmp.lt.s32.totalorder %s408_s4, %s408_s4 }
  0x1d   :  { %p415_p0 = por %p414_p13, %p413_p12 }
  0x1f   :  { %p416_p1 = pnand %p415_p0, %p409_p11 }
  0x21   :  { %419 = shalt.err (!%p416_p1)
}
  0x22   :  { %s452_s0 = smov 128   ;;  %s453_s5 = smov 8  }
  0x23   :  { %33 = dma.hbm_to_vmem [thread:$0]  %s519_s1, 2944, %s28_s24, [#allocation6], %s452_s0, %s452_s0, %s453_s5  }
  0x24   :  { %442 = dma.done.wait [#allocation3], 512  }
  0x25   :  { %443 = vsyncadd [#allocation3], 4294966784 }
  0x26   :  { %444 = dma.done.wait [#allocation6], 2944  }
  0x27   :  { %445 = vsyncadd [#allocation6], 4294964352  ;;  %v454_v0 = vmov 0.0|0.0   ;;  %v44_v1 = vld [vmem:[#allocation5] sm:$0xff]  ;;  %v45_v2 = vld [vmem:[#allocation5 + $0x8] sm:$0xff]  ;;  %vm72_vm0 = vcmask 261120  }
  0x28   :  { %319 = vmatprep.subr.bf16.mxu0 %v454_v0  ;;  %v46_v3 = vld [vmem:[#allocation5 + $0x10] sm:$0xff]  ;;  %v320_v4 = vpack.c.bf16 %v45_v2, %v44_v1  ;;  %v47_v5 = vld [vmem:[#allocation5 + $0x18] sm:$0xff]  ;;  %v48_v7 = vld [vmem:[#allocation5 + $0x20] sm:$0xff]  ;;  %s455_s1 = smov 80   ;;  %s456_s8 = smov 112   ;;  %vm200_vm1 = vcmask 130048  }
  0x29   :  { %v323_v6 = vpack.c.bf16 %v47_v5, %v46_v3  ;;  %v49_v8 = vld [vmem:[#allocation5 + $0x28] sm:$0xff]  ;;  %v50_v11 = vld [vmem:[#allocation5 + $0x30] sm:$0xff]  ;;  %v51_v12 = vld [vmem:[#allocation5 + $0x38] sm:$0xff]  ;;  %s457_s9 = smov 96   ;;  %s458_s10 = smov [#allocation7]  }
  0x2a   :  { %321 = vmatpush1.bf16.msra.mxu0 %v320_v4  ;;  %v41_v9 = vld [vmem:[#allocation2 + $0x8] sm:$0xff]  ;;  %v326_v10 = vpack.c.bf16 %v49_v8, %v48_v7  ;;  %v329_v13 = vpack.c.bf16 %v51_v12, %v50_v11  ;;  %v52_v14 = vld [vmem:[#allocation5 + $0x40] sm:$0xff]  ;;  %v54_v17 = vld [vmem:[#allocation5 + $0x50] sm:$0xff]  ;;  %s289_s11 = sshll.u32 %s458_s10, 4  ;;  %s290_s11 = int_to_ptr.vmem [resolvable:$true] %s289_s11 }
  0x2b   :  { %322 = vmatprep.subr.bf16.mxu0 %v454_v0  ;;  %303 = vmatprep.mubr.msk.f32.mxu0 %vm72_vm0, %v41_v9  ;;  %v53_v15 = vld [vmem:[#allocation5 + $0x48] sm:$0xff]  ;;  %v55_v18 = vld [vmem:[#allocation5 + $0x58] sm:$0xff]  ;;  %v56_v20 = vld [vmem:[#allocation5 + $0x60] sm:$0xff]  ;;  %s420_s12 = scalar_lea.vmem %s290_s11, 256  ;;  %p425_p3 = scmp.lt.s32.totalorder %s290_s11, %s290_s11 }
  0x2c   :  { %v332_v16 = vpack.c.bf16 %v53_v15, %v52_v14  ;;  %v335_v19 = vpack.c.bf16 %v55_v18, %v54_v17  ;;  %v57_v21 = vld [vmem:[#allocation5 + $0x68] sm:$0xff]  ;;  %v58_v23 = vld [vmem:[#allocation5 + $0x70] sm:$0xff]  ;;  %v59_v24 = vld [vmem:[#allocation5 + $0x78] sm:$0xff]  ;;  %p421_p2 = scmp.ne.s32.totalorder %s290_s11, %s420_s12  ;;  %p426_p4 = scmp.lt.s32.totalorder %s420_s12, %s420_s12 }
  0x2d   :  { %v338_v22 = vpack.c.bf16 %v57_v21, %v56_v20  ;;  %v341_v25 = vpack.c.bf16 %v59_v24, %v58_v23  ;;  %v60_v26 = vld [vmem:[#allocation5 + $0x80] sm:$0xff]  ;;  %v61_v27 = vld [vmem:[#allocation5 + $0x88] sm:$0xff]  ;;  %v62_v29 = vld [vmem:[#allocation5 + $0x90] sm:$0xff] }
  0x2e   :  { %324 = vmatpush1.bf16.msra.mxu0 %v323_v6  ;;  %v344_v28 = vpack.c.bf16 %v61_v27, %v60_v26  ;;  %v63_v30 = vld [vmem:[#allocation5 + $0x98] sm:$0xff]  ;;  %v40_v32 = vld [vmem:[#allocation2] sm:$0xff]  ;;  %v42_v34 = vld [vmem:[#allocation2 + $0x10] sm:$0xff]  ;;  %p427_p5 = por %p426_p4, %p425_p3 }
  0x2f   :  { %325 = vmatprep.subr.bf16.mxu0 %v454_v0  ;;  %v347_v31 = vpack.c.bf16 %v63_v30, %v62_v29  ;;  %v43_v33 = vld [vmem:[#allocation2 + $0x18] sm:$0xff]  ;;  %v302_v35 = vld [vmem:[#allocation5 + $0xb0] ss:$0 sm:$0xff]  ;;  %v64_v44 = vld [vmem:[#allocation5 + $0xa0] sm:$0xff] }
  0x30   :  { %v65_v45 = vld [vmem:[#allocation5 + $0xa8] sm:$0xff]  ;;  %v305_v7 = vld [vmem:[#allocation5 + $0xb1] ss:$0 sm:$0xff]  ;;  %p428_p6 = pnand %p427_p5, %p421_p2 }
  0x31   :  { %v349_v47 = vpack.c.bf16 %v65_v45, %v64_v44 }
  0x32   :  { %327 = vmatpush1.bf16.msra.mxu0 %v326_v10 }
  0x33   :  { %328 = vmatprep.subr.bf16.mxu0 %v454_v0  ;;  %350 = vmatprep.subr.bf16.mxu1 %v349_v47 }
  0x34   :  { %352 = vmatpush3.bf16.msra.mxu1 %v349_v47 }
  0x36   :  { %330 = vmatpush1.bf16.msra.mxu0 %v329_v13 }
  0x37   :  { %331 = vmatprep.subr.bf16.mxu0 %v454_v0 }
  0x3a   :  { %333 = vmatpush1.bf16.msra.mxu0 %v332_v16 }
  0x3b   :  { %334 = vmatprep.subr.bf16.mxu0 %v454_v0 }
  0x3e   :  { %336 = vmatpush1.bf16.msra.mxu0 %v335_v19 }
  0x3f   :  { %337 = vmatprep.subr.bf16.mxu0 %v454_v0 }
  0x42   :  { %339 = vmatpush1.bf16.msra.mxu0 %v338_v22 }
  0x43   :  { %340 = vmatprep.subr.bf16.mxu0 %v454_v0 }
  0x46   :  { %342 = vmatpush1.bf16.msra.mxu0 %v341_v25 }
  0x47   :  { %343 = vmatprep.subr.bf16.mxu0 %v454_v0 }
  0x4a   :  { %345 = vmatpush1.bf16.msra.mxu0 %v344_v28 }
  0x4b   :  { %346 = vmatprep.subr.bf16.mxu0 %v454_v0 }
  0x4e   :  { %348 = vmatpush1.bf16.msra.mxu0 %v347_v31 }
  0x51   :  { %144 = vmatmul.mubr.f32.vlgmr.msra.gmra.mrb[0].mxu0 %v40_v32 }
  0x52   :  { %304 = vmatprep.mubr.msk.f32.mxu0 %vm72_vm0, %v43_v33 }
  0x55   :  { %149 = vmatmul.mubr.f32.gmra.mrb[2].mxu0 %v42_v34 }
 0x124   :  { %v145_v36 = vpop.f32.mrb[0].mxu0 }
 0x125   :  { %v146_v37 = vadd.f32 %v302_v35, %v145_v36  ;;  %v147_v38 = vpop.f32.mrb[1].mxu0 }
 0x127   :  { %364 = vtanh.f32 %v146_v37  ;;  %178 = vrot.lane.b32.xlu1 %v146_v37, %s455_s1  ;;  %170 = vrot.lane.b32.xlu0 %v146_v37, %s456_s8 }
 0x128   :  { %v150_v39 = vpop.f32.mrb[2].mxu0 }
 0x129   :  { %v151_v40 = vadd.f32 %v302_v35, %v150_v39  ;;  %v152_v41 = vpop.f32.mrb[3].mxu0 }
 0x12b   :  { %366 = vtanh.f32 %v151_v40  ;;  %180 = vrot.lane.b32.xlu1 %v151_v40, %s455_s1  ;;  %172 = vrot.lane.b32.xlu0 %v151_v40, %s456_s8 }
 0x131   :  { %v365_v42 = vpop.eup %364 }
 0x132   :  { %v160_v43 = vsub.f32 0.0, %v365_v42  ;;  %v156_v53 = vmul.f32 1.442695, %v365_v42 }
 0x134   :  { %v162_v46 = vmul.f32 1.442695, %v160_v43 }
 0x135   :  { %v367_v48 = vpop.eup %366 }
 0x136   :  { %368 = vpow2.f32 %v162_v46  ;;  %v161_v49 = vsub.f32 0.0, %v367_v48  ;;  %v158_v54 = vmul.f32 1.442695, %v367_v48 }
 0x138   :  { %v164_v50 = vmul.f32 1.442695, %v161_v49 }
 0x13a   :  { %370 = vpow2.f32 %v164_v50 }
 0x13b   :  { %372 = vpow2.f32 %v156_v53 }
 0x13c   :  { %374 = vpow2.f32 %v158_v54 }
 0x140   :  { %v369_v51 = vpop.eup %368 }
 0x141   :  { %188 = vrot.lane.b32.xlu0 %v369_v51, %s457_s9 }
 0x144   :  { %v371_v52 = vpop.eup %370 }
 0x145   :  { %190 = vrot.lane.b32.xlu1 %v371_v52, %s457_s9  ;;  %v373_v55 = vpop.eup %372 }
 0x146   :  { %v166_v57 = vmul.f32 %v373_v55, %v40_v32  ;;  %v375_v58 = vpop.eup %374 }
 0x147   :  { %v167_v62 = vmul.f32 %v375_v58, %v42_v34 }
 0x199   :  { %v171_v56 = vpop.permute.xlu0 %170  ;;  %v179_v59 = vpop.permute.xlu1 %178 }
 0x19a   :  { %v176_v60 = vadd.f32 %v171_v56, %v166_v57 }
 0x19c   :  { %v184_v0 = vsub.f32 %v176_v60, %v179_v59 }
 0x19d   :  { %v173_v61 = vpop.permute.xlu0 %172  ;;  %v181_v1 = vpop.permute.xlu1 %180 }
 0x19e   :  { %v177_v63 = vadd.f32 %v173_v61, %v167_v62 }
 0x1a0   :  { %v185_v4 = vsub.f32 %v177_v63, %v181_v1 }
 0x1b3   :  { %v189_v2 = vpop.permute.xlu0 %188 }
 0x1b4   :  { %v194_v3 = vmul.f32 %v189_v2, %v184_v0 }
 0x1b6   :  { %316 = vmatprep.mubr.msk.f32.mxu1 %vm200_vm1, %v194_v3 }
 0x1b7   :  { %v191_v5 = vpop.permute.xlu1 %190 }
 0x1b8   :  { %v195_v6 = vmul.f32 %v191_v5, %v185_v4 }
 0x1ba   :  { %317 = vmatmul.mubr.msk.f32.vlgmr.msra.gmra.mrb[0].mxu1 %vm200_vm1, %v195_v6 }
 0x28d   :  { %v318_v8 = vpop.f32.mrb[0].mxu1 }
 0x28e   :  { %v279_v9 = vadd.f32 %v318_v8, %v305_v7  ;;  %v273_v10 = vpop.f32.mrb[1].mxu1 }
 0x28f   :  { %v274_v11 = vadd.f32 %v305_v7, %v273_v10 }
 0x290   :  { %283 = vst [vmem:[#allocation7 + $0x8] sm:$0xff] %v279_v9 }
 0x291   :  { %282 = vst [vmem:[#allocation7] sm:$0xff] %v274_v11 }
 0x292   :  { %431 = shalt.err (!%p428_p6)
}
 0x293   :  { %s432_s15 = scalar_lea.hbm %s520_s2, 256 }
 0x294   :  { %p433_p7 = scmp.ne.s32.totalorder %s520_s2, %s432_s15  ;;  %p436_p8 = scmp.lt.u32.totalorder %s432_s15, %s520_s2 }
 0x296   :  { %p438_p9 = pnand %p436_p8, %p433_p7 }
 0x298   :  { %441 = shalt.err (!%p438_p9)
}
 0x299   :  { %295 = dma.vmem_to_hbm [thread:$0]  %s290_s11, 256, %s520_s2, [#allocation4], %s452_s0, %s452_s0, %s453_s5  }
 0x29a   :  { %446 = dma.done.wait [#allocation4], 256  }
 0x29b   :  { %447 = vsyncadd [#allocation4], 4294967040 }
 0x29c   :  { %299 = vsyncpa [#allocation3], 1 }
 0x29d   :  { %300 = vsyncpa [#allocation6], 1 }
 0x29e   :  { %301 = vsyncpa [#allocation4], 1 }

</bundles_post_ra>
